<compile_context>
chip_gen: v5e
topology: v5e:2x2
jax: 0.10.0
libtpu: 0.0.40
codegen_flags: <defaults>
</compile_context>

<pallas_src>
import functools
import math

import numpy as np
import jax
import jax.numpy as jnp
from jax import lax
from jax.experimental import pallas as pl
from jax.experimental.pallas import tpu as pltpu


def ghost_kernel(x_top_ref, x_mid_ref, x_bot_ref, cmask_ref,
                 w1_ref, b1_ref, wd_ref, b2_ref, out_ref, *, W, HT, L):
    """One (image, spatial-row-tile, channel-tile) grid step.

    Block shapes:
      x_top_ref : (1, Cin, L)       block whose LAST W lanes are the halo row above
      x_mid_ref : (1, Cin, HT*W)    the HT output rows of this spatial tile
      x_bot_ref : (1, Cin, L)       block whose FIRST W lanes are the halo row below
      cmask_ref : (2, (HT+2)*W)     precomputed column masks (0: col!=W-1, 1: col!=0)
      w1_ref    : (tC, Cin)         1x1 conv weight, BN scale folded in
      b1_ref    : (tC, 1)           folded BN bias for the primary conv
      wd_ref    : (tC, 9)           3x3 depthwise weight (taps row-major), BN folded
      b2_ref    : (tC, 1)           folded BN bias for the cheap op
      out_ref   : (1, 2, tC, HT*W)  out[:,0]=x1, out[:,1]=x2 (channel concat later)
    """
    Cin = x_mid_ref.shape[1]
    tC = w1_ref.shape[0]
    Wwin = (HT + 2) * W
    s = pl.program_id(1)
    n_s = pl.num_programs(1)
    f32 = jnp.float32

    # Assemble the (Cin, (HT+2)*W) halo window: [row above | HT tile rows | row below].
    top_row = x_top_ref[0, :, L - W:]
    bot_row = x_bot_ref[0, :, :W]
    x_win = jnp.concatenate([top_row, x_mid_ref[0], bot_row], axis=-1)

    # ---- primary conv: 1x1 (BN scale folded) + bias + ReLU ---------------------
    if Cin < 8:
        # Tiny contraction: an MXU pass would waste >99% of the systolic array;
        # do Cin broadcast multiply-adds on the VPU over the lane-dense axis.
        xf = x_win.astype(f32)
        acc1 = jnp.zeros((tC, Wwin), f32)
        for ci in range(Cin):
            acc1 = acc1 + w1_ref[:, ci:ci + 1] * xf[ci:ci + 1, :]
    elif x_win.dtype == jnp.bfloat16:
        # MXU-native bf16 x bf16 with an f32 accumulator.
        acc1 = jnp.dot(w1_ref[...].astype(jnp.bfloat16), x_win,
                       preferred_element_type=f32)
    else:
        # f32 I/O: keep full precision through the MXU (review correctness note).
        acc1 = jnp.dot(w1_ref[...], x_win.astype(f32),
                       preferred_element_type=f32,
                       precision=lax.Precision.HIGHEST)
    x1 = jnp.maximum(acc1 + b1_ref[...], 0.0)                      # (tC, Wwin) f32

    # Zero the halo row's x1 when it lies outside the image (first / last tile
    # only).  One iota + two compares; the %W / //W masks are precomputed in the
    # wrapper and passed in as cmask.
    lane = lax.broadcasted_iota(jnp.int32, (1, Wwin), 1)
    lo = jnp.where(s == 0, W, 0)
    hi = jnp.where(s == n_s - 1, Wwin - W, Wwin)
    x1z = jnp.where(jnp.logical_and(lane >= lo, lane < hi), x1, 0.0)

    # Column-masked copies: kill the row-to-row wrap-around of +-1 lane shifts.
    x1L = x1z * cmask_ref[0:1, :]      # last column zeroed   (sources of dx=-1 taps)
    x1R = x1z * cmask_ref[1:2, :]      # first column zeroed  (sources of dx=+1 taps)

    # ---- cheap op: depthwise 3x3, SAME padding, register-resident --------------
    # Pure lane rolls (XLU slot) + multiply-adds; no per-tap selects, no VMEM pad.
    acc2 = x1z * wd_ref[:, 4:5]                                     # center tap
    for dy in (-1, 0, 1):
        for dx in (-1, 0, 1):
            if dy == 0 and dx == 0:
                continue
            t = (dy + 1) * 3 + (dx + 1)
            src = x1z if dx == 0 else (x1L if dx < 0 else x1R)
            off = dy * W + dx
            shifted = pltpu.roll(src, shift=(-off) % Wwin, axis=1)
            acc2 = acc2 + shifted * wd_ref[:, t:t + 1]
    x2 = jnp.maximum(acc2 + b2_ref[...], 0.0)

    # ---- write the HT real output rows (window lanes [W, W + HT*W)) ------------
    out_ref[0, 0, :, :] = x1z[:, W:W + HT * W].astype(out_ref.dtype)
    out_ref[0, 1, :, :] = x2[:, W:W + HT * W].astype(out_ref.dtype)


def _round_up(v, m):
    return (v + m - 1) // m * m


def _pick_channel_tile(cp):
    if cp <= 128:
        return cp
    for tc in (128, 64, 32, 16, 8):
        if cp % tc == 0:
            return tc
    return cp


def _pick_row_tile(H, W, row_bytes, budget=1 << 20, min_tiles=2):
    """Rows per spatial tile: prefer lane-dense (HT*W % 128 == 0) tiles of <=~1MiB."""
    cands = [ht for ht in range(1, H + 1) if H % ht == 0 and (ht * W) % 128 == 0]
    if not cands:
        return H                                    # un-tiled fallback (small stages)
    fit = [ht for ht in cands if ht * row_bytes <= budget] or [min(cands)]
    pref = [ht for ht in fit if H // ht >= min_tiles]
    return max(pref) if pref else max(fit)


def _pick_halo_block(HT, W):
    """Smallest 128-multiple lane block that divides HT*W and holds a full row."""
    tile = HT * W
    for mult in range(1, tile // 128 + 1):
        cand = 128 * mult
        if tile % cand == 0 and cand >= W:
            return cand
    return tile


def ghost_module_pallas(x_flat, w1, b1, wd9, b2, H, W):
    """x_flat: (N, Cin, H*W) -> (N, 2, CP, H*W) in x_flat.dtype (f32 math inside)."""
    N, Cin, HW = x_flat.shape
    CP = w1.shape[0]
    tC = _pick_channel_tile(CP)
    HT = _pick_row_tile(H, W, tC * W * 4)
    S = H // HT
    L = _pick_halo_block(HT, W)
    Wwin = (HT + 2) * W
    KB = (HT * W) // L            # halo-size lane blocks per spatial tile
    NB = HW // L                  # halo-size lane blocks in the whole image

    # Precomputed column masks (feedback: avoid per-step %W multiply-high chains).
    lanes = np.arange(Wwin) % W
    cmask = jnp.asarray(np.stack([lanes != W - 1, lanes != 0]).astype(np.float32))

    kernel = functools.partial(ghost_kernel, W=W, HT=HT, L=L)
    return pl.pallas_call(
        kernel,
        out_shape=jax.ShapeDtypeStruct((N, 2, CP, HW), x_flat.dtype),
        grid_spec=pltpu.PrefetchScalarGridSpec(
            num_scalar_prefetch=0,
            # Grid order (n, s, c): c innermost, so the (n, s)-indexed image blocks
            # keep the same block index across consecutive steps (no re-DMA); only
            # the tiny weight blocks are re-fetched when s advances.
            grid=(N, S, CP // tC),
            in_specs=[
                # halo row above the tile: last W lanes of this block
                pl.BlockSpec((1, Cin, L),
                             lambda n, s, c: (n, 0, jnp.maximum(s * KB - 1, 0))),
                # the HT output rows of this tile (lane-dense, HT*W % 128 == 0)
                pl.BlockSpec((1, Cin, HT * W), lambda n, s, c: (n, 0, s)),
                # halo row below the tile: first W lanes of this block
                pl.BlockSpec((1, Cin, L),
                             lambda n, s, c: (n, 0, jnp.minimum((s + 1) * KB, NB - 1))),
                pl.BlockSpec((2, Wwin), lambda n, s, c: (0, 0)),
                pl.BlockSpec((tC, Cin), lambda n, s, c: (c, 0)),
                pl.BlockSpec((tC, 1), lambda n, s, c: (c, 0)),
                pl.BlockSpec((tC, 9), lambda n, s, c: (c, 0)),
                pl.BlockSpec((tC, 1), lambda n, s, c: (c, 0)),
            ],
            out_specs=pl.BlockSpec((1, 2, tC, HT * W), lambda n, s, c: (n, 0, c, s)),
        ),
        compiler_params=pltpu.CompilerParams(
            dimension_semantics=("parallel", "parallel", "parallel"),
            vmem_limit_bytes=32 * 1024 * 1024),
    )(x_flat, x_flat, x_flat, cmask, w1, b1, wd9, b2)


def ghost_module_v1(x_nchw, w_primary, s1, b1, w_cheap, s2, b2, oup):
    """NCHW in -> NCHW out, matching GhostModulev1.forward (eval-mode BN).

    w_primary: (init_ch, inp, 1, 1)   PyTorch OIHW (kernel_size=1, stride=1)
    w_cheap  : (new_ch, 1, 3, 3)      PyTorch depthwise OIHW (ratio=2 -> new_ch==init_ch)
    s*, b*   : folded BatchNorm scale / bias vectors, shape (C,)
    Output dtype follows the input dtype (bf16 in -> bf16 out).
    """
    N, Cin, H, W = x_nchw.shape
    Cinit = w_primary.shape[0]
    assert w_cheap.shape[0] == Cinit, "ratio=2 only in this kernel"

    # Fold BN scales into the conv weights; pad channels to a multiple of 8 so the
    # (tC, lanes) working tiles fill whole f32 sublane groups.
    CP = _round_up(max(Cinit, 8), 8)
    pad = CP - Cinit
    w1 = jnp.pad((w_primary[:, :, 0, 0] * s1[:, None]).astype(jnp.float32),
                 ((0, pad), (0, 0)))
    wd9 = jnp.pad((w_cheap[:, 0, :, :].reshape(Cinit, 9) * s2[:, None]).astype(jnp.float32),
                  ((0, pad), (0, 0)))
    b1p = jnp.pad(b1.astype(jnp.float32), (0, pad))[:, None]
    b2p = jnp.pad(b2.astype(jnp.float32), (0, pad))[:, None]

    x_flat = x_nchw.reshape(N, Cin, H * W)          # free reshape, keeps input dtype
    out = ghost_module_pallas(x_flat, w1, b1p, wd9, b2p, H, W)
    out = out.reshape(N, 2 * CP, H, W)
    # channel concat([x1, x2])[:, :oup] with the channel padding stripped
    return jnp.concatenate([out[:, :Cinit], out[:, CP:CP + Cinit]], axis=1)[:, :oup]


def reference(x_nchw, w_primary, s1, b1, w_cheap, s2, b2, oup):
    """Plain-JAX reference (eval-mode BN), full f32 precision."""
    x1 = lax.conv_general_dilated(x_nchw, w_primary, (1, 1), 'VALID',
                                  dimension_numbers=('NCHW', 'OIHW', 'NCHW'),
                                  precision=lax.Precision.HIGHEST)
    x1 = jnp.maximum(x1 * s1[None, :, None, None] + b1[None, :, None, None], 0.0)
    x2 = lax.conv_general_dilated(x1, w_cheap, (1, 1), 'SAME',
                                  dimension_numbers=('NCHW', 'OIHW', 'NCHW'),
                                  feature_group_count=w_cheap.shape[0],
                                  precision=lax.Precision.HIGHEST)
    x2 = jnp.maximum(x2 * s2[None, :, None, None] + b2[None, :, None, None], 0.0)
    return jnp.concatenate([x1, x2], axis=1)[:, :oup]


def fold_bn(gamma, beta, mean, var, eps=1e-5):
    scale = gamma / jnp.sqrt(var + eps)
    bias = beta - mean * scale
    return scale, bias


if __name__ == "__main__":
    # Module defaults: kernel_size=1, ratio=2, dw_size=3, stride=1, relu=True
    N, inp, Hsp, Wsp = 2, 4, 16, 16
    oup = 8
    ratio = 2
    init_channels = math.ceil(oup / ratio)                  # 4
    new_channels = init_channels * (ratio - 1)              # 4

    key = jax.random.PRNGKey(0)
    ks = jax.random.split(key, 12)

    # Synthetic parameters (shapes exactly as in the PyTorch module __init__)
    w_primary = jax.random.normal(ks[0], (init_channels, inp, 1, 1), jnp.float32) * 0.5
    w_cheap = jax.random.normal(ks[1], (new_channels, 1, 3, 3), jnp.float32) * 0.5

    # BN params (eval-mode running stats), folded into per-channel scale/bias
    g1 = jax.random.uniform(ks[2], (init_channels,), jnp.float32, 0.5, 1.5)
    bt1 = jax.random.normal(ks[3], (init_channels,), jnp.float32) * 0.1
    m1 = jax.random.normal(ks[4], (init_channels,), jnp.float32) * 0.1
    v1 = jax.random.uniform(ks[5], (init_channels,), jnp.float32, 0.5, 1.5)
    g2 = jax.random.uniform(ks[6], (new_channels,), jnp.float32, 0.5, 1.5)
    bt2 = jax.random.normal(ks[7], (new_channels,), jnp.float32) * 0.1
    m2 = jax.random.normal(ks[8], (new_channels,), jnp.float32) * 0.1
    v2 = jax.random.uniform(ks[9], (new_channels,), jnp.float32, 0.5, 1.5)
    s1, b1 = fold_bn(g1, bt1, m1, v1)
    s2, b2 = fold_bn(g2, bt2, m2, v2)

    # Input in PyTorch NCHW convention
    x = jax.random.normal(ks[10], (N, inp, Hsp, Wsp), jnp.float32)

    # f32 I/O path: exact check against an f32 reference
    out = jax.block_until_ready(
        ghost_module_v1(x, w_primary, s1, b1, w_cheap, s2, b2, oup))
    ref = reference(x, w_primary, s1, b1, w_cheap, s2, b2, oup)
    assert out.shape == (N, oup, Hsp, Wsp), out.shape
    assert out.dtype == jnp.float32, out.dtype
    np.testing.assert_allclose(np.asarray(out), np.asarray(ref), rtol=1e-4, atol=1e-4)

    # bf16 I/O path (feedback: halve HBM traffic; f32 accumulation kept inside)
    x_bf = x.astype(jnp.bfloat16)
    out_bf = jax.block_until_ready(
        ghost_module_v1(x_bf, w_primary, s1, b1, w_cheap, s2, b2, oup))
    assert out_bf.shape == (N, oup, Hsp, Wsp), out_bf.shape
    assert out_bf.dtype == jnp.bfloat16, out_bf.dtype
    ref_bf = reference(x_bf.astype(jnp.float32), w_primary, s1, b1, w_cheap, s2, b2, oup)
    np.testing.assert_allclose(np.asarray(out_bf.astype(jnp.float32)),
                               np.asarray(ref_bf), rtol=5e-2, atol=5e-2)

    print("KERNEL_OK")
</pallas_src>

<mosaic_0001>
module attributes {stable_mosaic.version = 11 : i64} {
  func.func @ghost_kernel(%arg0: i32, %arg1: i32, %arg2: i32, %arg3: memref<1x4x128xf32, #tpu.memory_space<vmem>>, %arg4: memref<1x4x128xf32, #tpu.memory_space<vmem>>, %arg5: memref<1x4x128xf32, #tpu.memory_space<vmem>>, %arg6: memref<2x160xf32, #tpu.memory_space<vmem>>, %arg7: memref<8x4xf32, #tpu.memory_space<vmem>>, %arg8: memref<8x1xf32, #tpu.memory_space<vmem>>, %arg9: memref<8x9xf32, #tpu.memory_space<vmem>>, %arg10: memref<8x1xf32, #tpu.memory_space<vmem>>, %arg11: memref<1x2x8x128xf32, #tpu.memory_space<vmem>>) attributes {dimension_semantics = [#tpu.dimension_semantics<parallel>, #tpu.dimension_semantics<parallel>, #tpu.dimension_semantics<parallel>], iteration_bounds = array<i64: 2, 2, 1>, scalar_prefetch = 0 : i64, scratch_operands = 0 : i64, tpu.core_type = #tpu.core_type<tc>, window_params = [{transform_indices = @transform_0, window_bounds = array<i64: 1, 4, 128>}, {transform_indices = @transform_1, window_bounds = array<i64: 1, 4, 128>}, {transform_indices = @transform_2, window_bounds = array<i64: 1, 4, 128>}, {pipeline_mode = #tpu.pipeline_mode<synchronous>, transform_indices = @transform_3, window_bounds = array<i64: 2, 160>}, {transform_indices = @transform_4, window_bounds = array<i64: 8, 4>}, {transform_indices = @transform_5, window_bounds = array<i64: 8, 1>}, {transform_indices = @transform_6, window_bounds = array<i64: 8, 9>}, {transform_indices = @transform_7, window_bounds = array<i64: 8, 1>}, {transform_indices = @transform_8, window_bounds = array<i64: 1, 2, 8, 128>}]} {
    %c0 = arith.constant 0 : index
    %c0_0 = arith.constant 0 : index
    %c112 = arith.constant 112 : index
    %0 = vector.load %arg3[%c0, %c0_0, %c112] : memref<1x4x128xf32, #tpu.memory_space<vmem>>, vector<1x4x16xf32>
    %1 = vector.shape_cast %0 : vector<1x4x16xf32> to vector<4x16xf32>
    %c0_1 = arith.constant 0 : index
    %c0_2 = arith.constant 0 : index
    %c0_3 = arith.constant 0 : index
    %2 = vector.load %arg5[%c0_1, %c0_2, %c0_3] : memref<1x4x128xf32, #tpu.memory_space<vmem>>, vector<1x4x16xf32>
    %3 = vector.shape_cast %2 : vector<1x4x16xf32> to vector<4x16xf32>
    %c0_4 = arith.constant 0 : index
    %c0_5 = arith.constant 0 : index
    %c0_6 = arith.constant 0 : index
    %4 = vector.load %arg4[%c0_4, %c0_5, %c0_6] : memref<1x4x128xf32, #tpu.memory_space<vmem>>, vector<1x4x128xf32>
    %5 = vector.shape_cast %4 : vector<1x4x128xf32> to vector<4x128xf32>
    %6 = tpu.concatenate %1, %5, %3 in 1 : vector<4x16xf32>, vector<4x128xf32>, vector<4x16xf32> -> vector<4x160xf32>
    %cst = arith.constant 0.000000e+00 : f32
    %7 = vector.broadcast %cst : f32 to vector<8x160xf32>
    %c0_7 = arith.constant 0 : index
    %c0_8 = arith.constant 0 : index
    %8 = vector.load %arg7[%c0_7, %c0_8] : memref<8x4xf32, #tpu.memory_space<vmem>>, vector<8x1xf32>
    %9 = vector.extract_strided_slice %6 {offsets = [0, 0], sizes = [1, 160], strides = [1, 1]} : vector<4x160xf32> to vector<1x160xf32>
    %10 = vector.broadcast %8 : vector<8x1xf32> to vector<8x160xf32>
    %11 = vector.broadcast %9 : vector<1x160xf32> to vector<8x160xf32>
    %12 = arith.mulf %10, %11 : vector<8x160xf32>
    %13 = arith.addf %7, %12 : vector<8x160xf32>
    %c0_9 = arith.constant 0 : index
    %c1 = arith.constant 1 : index
    %14 = vector.load %arg7[%c0_9, %c1] : memref<8x4xf32, #tpu.memory_space<vmem>>, vector<8x1xf32>
    %15 = vector.extract_strided_slice %6 {offsets = [1, 0], sizes = [1, 160], strides = [1, 1]} : vector<4x160xf32> to vector<1x160xf32>
    %16 = vector.broadcast %14 : vector<8x1xf32> to vector<8x160xf32>
    %17 = vector.broadcast %15 : vector<1x160xf32> to vector<8x160xf32>
    %18 = arith.mulf %16, %17 : vector<8x160xf32>
    %19 = arith.addf %13, %18 : vector<8x160xf32>
    %c0_10 = arith.constant 0 : index
    %c2 = arith.constant 2 : index
    %20 = vector.load %arg7[%c0_10, %c2] : memref<8x4xf32, #tpu.memory_space<vmem>>, vector<8x1xf32>
    %21 = vector.extract_strided_slice %6 {offsets = [2, 0], sizes = [1, 160], strides = [1, 1]} : vector<4x160xf32> to vector<1x160xf32>
    %22 = vector.broadcast %20 : vector<8x1xf32> to vector<8x160xf32>
    %23 = vector.broadcast %21 : vector<1x160xf32> to vector<8x160xf32>
    %24 = arith.mulf %22, %23 : vector<8x160xf32>
    %25 = arith.addf %19, %24 : vector<8x160xf32>
    %c0_11 = arith.constant 0 : index
    %c3 = arith.constant 3 : index
    %26 = vector.load %arg7[%c0_11, %c3] : memref<8x4xf32, #tpu.memory_space<vmem>>, vector<8x1xf32>
    %27 = vector.extract_strided_slice %6 {offsets = [3, 0], sizes = [1, 160], strides = [1, 1]} : vector<4x160xf32> to vector<1x160xf32>
    %28 = vector.broadcast %26 : vector<8x1xf32> to vector<8x160xf32>
    %29 = vector.broadcast %27 : vector<1x160xf32> to vector<8x160xf32>
    %30 = arith.mulf %28, %29 : vector<8x160xf32>
    %31 = arith.addf %25, %30 : vector<8x160xf32>
    %c0_12 = arith.constant 0 : index
    %c0_13 = arith.constant 0 : index
    %32 = vector.load %arg8[%c0_12, %c0_13] : memref<8x1xf32, #tpu.memory_space<vmem>>, vector<8x1xf32>
    %33 = vector.broadcast %32 : vector<8x1xf32> to vector<8x160xf32>
    %34 = arith.addf %31, %33 : vector<8x160xf32>
    %cst_14 = arith.constant 0.000000e+00 : f32
    %35 = vector.broadcast %cst_14 : f32 to vector<8x160xf32>
    %36 = arith.maximumf %34, %35 : vector<8x160xf32>
    %37 = tpu.iota {dimensions = array<i32: 1>} : vector<1x160xi32>
    %c0_i32 = arith.constant 0 : i32
    %38 = arith.cmpi eq, %arg1, %c0_i32 : i32
    %c16_i32 = arith.constant 16 : i32
    %c0_i32_15 = arith.constant 0 : i32
    %39 = arith.select %38, %c16_i32, %c0_i32_15 : i32
    %c1_i32 = arith.constant 1 : i32
    %40 = arith.cmpi eq, %arg1, %c1_i32 : i32
    %c144_i32 = arith.constant 144 : i32
    %c160_i32 = arith.constant 160 : i32
    %41 = arith.select %40, %c144_i32, %c160_i32 : i32
    %42 = vector.broadcast %39 : i32 to vector<1x160xi32>
    %43 = arith.cmpi sge, %37, %42 : vector<1x160xi32>
    %44 = vector.broadcast %41 : i32 to vector<1x160xi32>
    %45 = arith.cmpi slt, %37, %44 : vector<1x160xi32>
    %46 = arith.andi %43, %45 : vector<1x160xi1>
    %cst_16 = arith.constant 0.000000e+00 : f32
    %47 = vector.shape_cast %46 : vector<1x160xi1> to vector<1x160xi1>
    %48 = vector.broadcast %47 : vector<1x160xi1> to vector<8x160xi1>
    %49 = vector.broadcast %cst_16 : f32 to vector<8x160xf32>
    %50 = arith.select %48, %36, %49 : vector<8x160xi1>, vector<8x160xf32>
    %c0_17 = arith.constant 0 : index
    %c0_18 = arith.constant 0 : index
    %51 = vector.load %arg6[%c0_17, %c0_18] : memref<2x160xf32, #tpu.memory_space<vmem>>, vector<1x160xf32>
    %52 = vector.broadcast %51 : vector<1x160xf32> to vector<8x160xf32>
    %53 = arith.mulf %50, %52 : vector<8x160xf32>
    %c1_19 = arith.constant 1 : index
    %c0_20 = arith.constant 0 : index
    %54 = vector.load %arg6[%c1_19, %c0_20] : memref<2x160xf32, #tpu.memory_space<vmem>>, vector<1x160xf32>
    %55 = vector.broadcast %54 : vector<1x160xf32> to vector<8x160xf32>
    %56 = arith.mulf %50, %55 : vector<8x160xf32>
    %c0_21 = arith.constant 0 : index
    %c4 = arith.constant 4 : index
    %57 = vector.load %arg9[%c0_21, %c4] : memref<8x9xf32, #tpu.memory_space<vmem>>, vector<8x1xf32>
    %58 = vector.broadcast %57 : vector<8x1xf32> to vector<8x160xf32>
    %59 = arith.mulf %50, %58 : vector<8x160xf32>
    %c17_i32 = arith.constant 17 : i32
    %60 = tpu.dynamic_rotate %53 by %c17_i32 dim 1 : vector<8x160xf32>, i32 -> vector<8x160xf32>
    %c0_22 = arith.constant 0 : index
    %c0_23 = arith.constant 0 : index
    %61 = vector.load %arg9[%c0_22, %c0_23] : memref<8x9xf32, #tpu.memory_space<vmem>>, vector<8x1xf32>
    %62 = vector.broadcast %61 : vector<8x1xf32> to vector<8x160xf32>
    %63 = arith.mulf %60, %62 : vector<8x160xf32>
    %64 = arith.addf %59, %63 : vector<8x160xf32>
    %c16_i32_24 = arith.constant 16 : i32
    %65 = tpu.dynamic_rotate %50 by %c16_i32_24 dim 1 : vector<8x160xf32>, i32 -> vector<8x160xf32>
    %c0_25 = arith.constant 0 : index
    %c1_26 = arith.constant 1 : index
    %66 = vector.load %arg9[%c0_25, %c1_26] : memref<8x9xf32, #tpu.memory_space<vmem>>, vector<8x1xf32>
    %67 = vector.broadcast %66 : vector<8x1xf32> to vector<8x160xf32>
    %68 = arith.mulf %65, %67 : vector<8x160xf32>
    %69 = arith.addf %64, %68 : vector<8x160xf32>
    %c15_i32 = arith.constant 15 : i32
    %70 = tpu.dynamic_rotate %56 by %c15_i32 dim 1 : vector<8x160xf32>, i32 -> vector<8x160xf32>
    %c0_27 = arith.constant 0 : index
    %c2_28 = arith.constant 2 : index
    %71 = vector.load %arg9[%c0_27, %c2_28] : memref<8x9xf32, #tpu.memory_space<vmem>>, vector<8x1xf32>
    %72 = vector.broadcast %71 : vector<8x1xf32> to vector<8x160xf32>
    %73 = arith.mulf %70, %72 : vector<8x160xf32>
    %74 = arith.addf %69, %73 : vector<8x160xf32>
    %c1_i32_29 = arith.constant 1 : i32
    %75 = tpu.dynamic_rotate %53 by %c1_i32_29 dim 1 : vector<8x160xf32>, i32 -> vector<8x160xf32>
    %c0_30 = arith.constant 0 : index
    %c3_31 = arith.constant 3 : index
    %76 = vector.load %arg9[%c0_30, %c3_31] : memref<8x9xf32, #tpu.memory_space<vmem>>, vector<8x1xf32>
    %77 = vector.broadcast %76 : vector<8x1xf32> to vector<8x160xf32>
    %78 = arith.mulf %75, %77 : vector<8x160xf32>
    %79 = arith.addf %74, %78 : vector<8x160xf32>
    %c159_i32 = arith.constant 159 : i32
    %80 = tpu.dynamic_rotate %56 by %c159_i32 dim 1 : vector<8x160xf32>, i32 -> vector<8x160xf32>
    %c0_32 = arith.constant 0 : index
    %c5 = arith.constant 5 : index
    %81 = vector.load %arg9[%c0_32, %c5] : memref<8x9xf32, #tpu.memory_space<vmem>>, vector<8x1xf32>
    %82 = vector.broadcast %81 : vector<8x1xf32> to vector<8x160xf32>
    %83 = arith.mulf %80, %82 : vector<8x160xf32>
    %84 = arith.addf %79, %83 : vector<8x160xf32>
    %c145_i32 = arith.constant 145 : i32
    %85 = tpu.dynamic_rotate %53 by %c145_i32 dim 1 : vector<8x160xf32>, i32 -> vector<8x160xf32>
    %c0_33 = arith.constant 0 : index
    %c6 = arith.constant 6 : index
    %86 = vector.load %arg9[%c0_33, %c6] : memref<8x9xf32, #tpu.memory_space<vmem>>, vector<8x1xf32>
    %87 = vector.broadcast %86 : vector<8x1xf32> to vector<8x160xf32>
    %88 = arith.mulf %85, %87 : vector<8x160xf32>
    %89 = arith.addf %84, %88 : vector<8x160xf32>
    %c144_i32_34 = arith.constant 144 : i32
    %90 = tpu.dynamic_rotate %50 by %c144_i32_34 dim 1 : vector<8x160xf32>, i32 -> vector<8x160xf32>
    %c0_35 = arith.constant 0 : index
    %c7 = arith.constant 7 : index
    %91 = vector.load %arg9[%c0_35, %c7] : memref<8x9xf32, #tpu.memory_space<vmem>>, vector<8x1xf32>
    %92 = vector.broadcast %91 : vector<8x1xf32> to vector<8x160xf32>
    %93 = arith.mulf %90, %92 : vector<8x160xf32>
    %94 = arith.addf %89, %93 : vector<8x160xf32>
    %c143_i32 = arith.constant 143 : i32
    %95 = tpu.dynamic_rotate %56 by %c143_i32 dim 1 : vector<8x160xf32>, i32 -> vector<8x160xf32>
    %c0_36 = arith.constant 0 : index
    %c8 = arith.constant 8 : index
    %96 = vector.load %arg9[%c0_36, %c8] : memref<8x9xf32, #tpu.memory_space<vmem>>, vector<8x1xf32>
    %97 = vector.broadcast %96 : vector<8x1xf32> to vector<8x160xf32>
    %98 = arith.mulf %95, %97 : vector<8x160xf32>
    %99 = arith.addf %94, %98 : vector<8x160xf32>
    %c0_37 = arith.constant 0 : index
    %c0_38 = arith.constant 0 : index
    %100 = vector.load %arg10[%c0_37, %c0_38] : memref<8x1xf32, #tpu.memory_space<vmem>>, vector<8x1xf32>
    %101 = vector.broadcast %100 : vector<8x1xf32> to vector<8x160xf32>
    %102 = arith.addf %99, %101 : vector<8x160xf32>
    %cst_39 = arith.constant 0.000000e+00 : f32
    %103 = vector.broadcast %cst_39 : f32 to vector<8x160xf32>
    %104 = arith.maximumf %102, %103 : vector<8x160xf32>
    %105 = vector.extract_strided_slice %50 {offsets = [0, 16], sizes = [8, 128], strides = [1, 1]} : vector<8x160xf32> to vector<8x128xf32>
    %c0_40 = arith.constant 0 : index
    %c0_41 = arith.constant 0 : index
    %c0_42 = arith.constant 0 : index
    %c0_43 = arith.constant 0 : index
    %106 = vector.load %arg11[%c0_40, %c0_41, %c0_42, %c0_43] : memref<1x2x8x128xf32, #tpu.memory_space<vmem>>, vector<1x1x8x128xf32>
    %107 = vector.shape_cast %106 : vector<1x1x8x128xf32> to vector<8x128xf32>
    %108 = vector.shape_cast %105 : vector<8x128xf32> to vector<1x1x8x128xf32>
    tpu.vector_store %arg11[%c0_40, %c0_41, %c0_42, %c0_43], %108 {strides = array<i32>} : memref<1x2x8x128xf32, #tpu.memory_space<vmem>>, vector<1x1x8x128xf32>,
    %109 = vector.extract_strided_slice %104 {offsets = [0, 16], sizes = [8, 128], strides = [1, 1]} : vector<8x160xf32> to vector<8x128xf32>
    %c0_44 = arith.constant 0 : index
    %c1_45 = arith.constant 1 : index
    %c0_46 = arith.constant 0 : index
    %c0_47 = arith.constant 0 : index
    %110 = vector.load %arg11[%c0_44, %c1_45, %c0_46, %c0_47] : memref<1x2x8x128xf32, #tpu.memory_space<vmem>>, vector<1x1x8x128xf32>
    %111 = vector.shape_cast %110 : vector<1x1x8x128xf32> to vector<8x128xf32>
    %112 = vector.shape_cast %109 : vector<8x128xf32> to vector<1x1x8x128xf32>
    tpu.vector_store %arg11[%c0_44, %c1_45, %c0_46, %c0_47], %112 {strides = array<i32>} : memref<1x2x8x128xf32, #tpu.memory_space<vmem>>, vector<1x1x8x128xf32>,
    return
  }
  func.func @transform_0(%arg0: i32, %arg1: i32, %arg2: i32) -> (i32, i32, i32) {
    %c1_i32 = arith.constant 1 : i32
    %0 = arith.muli %arg1, %c1_i32 : i32
    %c1_i32_0 = arith.constant 1 : i32
    %1 = arith.subi %0, %c1_i32_0 : i32
    %c0_i32 = arith.constant 0 : i32
    %2 = arith.maxsi %1, %c0_i32 : i32
    %c0_i32_1 = arith.constant 0 : i32
    %c0_i32_2 = arith.constant 0 : i32
    return %arg0, %c0_i32_1, %2 : i32, i32, i32
  }
  func.func @transform_1(%arg0: i32, %arg1: i32, %arg2: i32) -> (i32, i32, i32) {
    %c0_i32 = arith.constant 0 : i32
    %c0_i32_0 = arith.constant 0 : i32
    return %arg0, %c0_i32, %arg1 : i32, i32, i32
  }
  func.func @transform_2(%arg0: i32, %arg1: i32, %arg2: i32) -> (i32, i32, i32) {
    %c1_i32 = arith.constant 1 : i32
    %0 = arith.addi %arg1, %c1_i32 : i32
    %c1_i32_0 = arith.constant 1 : i32
    %1 = arith.muli %0, %c1_i32_0 : i32
    %c1_i32_1 = arith.constant 1 : i32
    %2 = arith.minsi %1, %c1_i32_1 : i32
    %c0_i32 = arith.constant 0 : i32
    %c0_i32_2 = arith.constant 0 : i32
    return %arg0, %c0_i32, %2 : i32, i32, i32
  }
  func.func @transform_3(%arg0: i32, %arg1: i32, %arg2: i32) -> (i32, i32) {
    %c0_i32 = arith.constant 0 : i32
    %c0_i32_0 = arith.constant 0 : i32
    %c0_i32_1 = arith.constant 0 : i32
    return %c0_i32, %c0_i32_0 : i32, i32
  }
  func.func @transform_4(%arg0: i32, %arg1: i32, %arg2: i32) -> (i32, i32) {
    %c0_i32 = arith.constant 0 : i32
    %c0_i32_0 = arith.constant 0 : i32
    return %arg2, %c0_i32 : i32, i32
  }
  func.func @transform_5(%arg0: i32, %arg1: i32, %arg2: i32) -> (i32, i32) {
    %c0_i32 = arith.constant 0 : i32
    %c0_i32_0 = arith.constant 0 : i32
    return %arg2, %c0_i32 : i32, i32
  }
  func.func @transform_6(%arg0: i32, %arg1: i32, %arg2: i32) -> (i32, i32) {
    %c0_i32 = arith.constant 0 : i32
    %c0_i32_0 = arith.constant 0 : i32
    return %arg2, %c0_i32 : i32, i32
  }
  func.func @transform_7(%arg0: i32, %arg1: i32, %arg2: i32) -> (i32, i32) {
    %c0_i32 = arith.constant 0 : i32
    %c0_i32_0 = arith.constant 0 : i32
    return %arg2, %c0_i32 : i32, i32
  }
  func.func @transform_8(%arg0: i32, %arg1: i32, %arg2: i32) -> (i32, i32, i32, i32) {
    %c0_i32 = arith.constant 0 : i32
    %c0_i32_0 = arith.constant 0 : i32
    return %arg0, %c0_i32, %arg2, %arg1 : i32, i32, i32, i32
  }
}

</mosaic_0001>

<bundles_post_ra>
// kernel: tpu_custom_call.1
= control target key start
LH: loop header
LB: loop body
LE: loop exit
PB: predicated region body
PF: predicated region fallthrough
CT: control target
= control target key end

     0   :  { %s1841_s0 = inlined_call_operand.vmem [shape: f32[2,4,256], index: 0, kind: input, shape index: {}]   ;;  %s1842_s1 = inlined_call_operand.hbm [shape: f32[2,4,256], index: 1, kind: input, shape index: {}]   ;;  %s1843_s2 = inlined_call_operand.hbm [shape: f32[2,4,256], index: 2, kind: input, shape index: {}]   ;;  %s1844_s3 = inlined_call_operand.vmem [shape: f32[2,160], index: 3, kind: input, shape index: {}]   ;;  %s1845_s4 = inlined_call_operand.vmem [shape: f32[8,4], index: 4, kind: input, shape index: {}]   ;;  %s1846_s5 = inlined_call_operand.vmem [shape: f32[8,1], index: 5, kind: input, shape index: {}]   ;;  %s1847_s6 = inlined_call_operand.vmem [shape: f32[8,9], index: 6, kind: input, shape index: {}]   ;;  %s1848_s7 = inlined_call_operand.vmem [shape: f32[8,1], index: 7, kind: input, shape index: {}]   ;;  %s1849_s8 = inlined_call_operand.hbm [shape: f32[2,2,8,256], index: 8, kind: output, shape index: {}]  }
   0x1   :  { %1860 = sst [smem:[#allocation18_spill]] %s1842_s1 }
   0x2   :  { %1861 = sst [smem:[#allocation19_spill]] %s1844_s3 }
   0x3   :  { %1862 = sst [smem:[#allocation20_spill]] %s1848_s7 }
   0x4   :  { %1863 = sst [smem:[#allocation21_spill]] %s1849_s8 }
   0x5   :  { %13 = vsyncpa [#allocation3], 0 }
   0x6   :  { %15 = vsyncpa [#allocation3 + $0x1], 0 }
   0x7   :  { %16 = vsyncpa [#allocation6], 0 }
   0x8   :  { %18 = vsyncpa [#allocation6 + $0x1], 0 }
   0x9   :  { %19 = vsyncpa [#allocation4], 0 }
   0xa   :  { %21 = vsyncpa [#allocation4 + $0x1], 0  ;;  %s1478_s27 = smov 0   ;;  %s1480_s28 = smov 0  }
   0xb   :  { %s1482_s29 = smov 0   ;;  %s1484_s30 = smov 0  }
   0xc   :  { %s1486_s9 = smov 0   ;;  %s1488_s10 = smov 0  }
   0xd   :  { %s1490_s11 = smov 0   ;;  %s1492_s12 = smov 0  }
   0xe   :  { %s1494_s13 = smov 0   ;;  %s1496_s14 = smov 0  }
   0xf   :  { %s1498_s15 = smov 0  }
  0x10 LB: > { %1864 = sst [smem:[#allocation11_spill]] %s1384_s30  ;;  %s1045_s16 = sadd.s32 4294967295, %s1412_s15   ;;  %s1412_s15 = sphi %s1498_s15, %s27_s15   ;;  %s1408_s14 = sphi %s1496_s14, %s1894_s14   ;;  %s1404_s13 = sphi %s1494_s13, %s1902_s13   ;;  %s1400_s12 = sphi %s1492_s12, %s1892_s12   ;;  %s1396_s11 = sphi %s1490_s11, %s1901_s11   ;;  %s1392_s10 = sphi %s1488_s10, %s1900_s10   ;;  %s1388_s9 = sphi %s1486_s9, %s1899_s9   ;;  %s1384_s30 = sphi %s1484_s30, %s1898_s30   ;;  %s1380_s29 = sphi %s1482_s29, %s1897_s29   ;;  %s1376_s28 = sphi %s1480_s28, %s1896_s28   ;;  %s1372_s27 = sphi %s1478_s27, %s1895_s27  }
  0x11   : > { %1865 = sst [smem:[#allocation12_spill]] %s1408_s14  ;;  %s1046_s17 = sadd.s32 4294967294, %s1412_s15  }
  0x12   : > { %s42_s18 = sadd.s32 1, %s1404_s13  ;;  %s46_s19 = sadd.s32 1, %s1408_s14 }
  0x13   : > { %p44_p0 = scmp.ge.s32.totalorder %s42_s18, 2  ;;  %s89_s20 = sadd.s32 1, %s1392_s10 }
  0x14   : > { %p96_p1 = scmp.ne.s32.totalorder %s1392_s10, %s1388_s9  ;;  %p97_p2 = scmp.eq.s32.totalorder %s1412_s15, 0 }
  0x15   : > { %s1904_s18 = smov (%p44_p0, %s42_s18), 0  ;;  %s1906_s19 = smov (!%p44_p0, %s46_s19), %s1408_s14 }
  0x16   : > { %1866 = sst [smem:[#allocation13_spill]] %s1904_s18  ;;  %s85_s21 = ssub.s32 %s1404_s13, %s1904_s18 }
  0x17   : > { %p1548_p3 = por %p97_p2, %p96_p1  ;;  %p48_p4 = scmp.ge.s32.totalorder %s1906_s19, 2 }
  0x18   : > { %p102_p5 = scmp.ne.s32.totalorder %s1388_s9, %s1384_s30  ;;  %p1554_p6 = scmp.eq.s32.totalorder %s1045_s16, 0 }
  0x19   : > { %p289_p7 = scmp.eq.s32.totalorder %s1045_s16, 3  ;;  %s1908_s19 = smov (%p48_p4, %s1906_s19), 0 }
  0x1a   : > { %1869 = sst [smem:[#allocation14_spill]] %s1908_s19  ;;  %p1562_p8 = por %p1554_p6, %p102_p5 }
  0x1b   : > { %p1566_p9 = por %p289_p7, %p96_p1  ;;  %s1572_s26 = ssub.s32 %s1408_s14, %s1908_s19 }
  0x1c   : > { %p295_p10 = scmp.eq.s32.totalorder %s1046_s17, 3  ;;  %s86_s18 = sor.u32 %s85_s21, %s1572_s26 }
  0x1d   : > { %s1871_s25 = scalar_select %p1566_p9, 1, 0 }
  0x1e   : > { %p87_p11 = scmp.eq.s32.totalorder %s86_s18, 0  ;;  %p1575_p12 = por %p295_p10, %p102_p5 }
  0x1f   : > { %1872 = sst [smem:[#allocation15_spill]] %s1871_s25  ;;  %p1858_p13 = scmp.lt.s32.totalorder %s1412_s15, 4 }
  0x20   : > { %s1873_s16 = scalar_select %p1575_p12, 1, 0 }
  0x21   : > { %s363_s30 = sand.u32 1, %s1392_s10   ;;  %s1056_s19 = sshll.u32 %s1408_s14, 1 }
  0x22   : > { %1874 = sst [smem:[#allocation16_spill]] %s1873_s16  ;;  %s1055_s7 = sshll.u32 %s363_s30, 2 }
  0x23   : > { %s1582_s8 = scalar_select %p87_p11, %s1392_s10, %s89_s20  }
  0x24   : > { %s371_s25 = sadd.s32 %s1404_s13, %s1056_s19  ;;  %s367_s17 = scalar_lea.vmem [#allocation2], %s1055_s7 }
  0x25   : > { %1875 = sst [smem:[#allocation17_spill]] %s1582_s8  ;;  %s377_s18 = sshll.u32 %s367_s17, 4  ;;  %s378_s18 = int_to_ptr.vmem [resolvable:$true] %s377_s18 }
  0x26   : > { %s1057_s21 = sshll.u32 %s371_s25, 2  ;;  %s1876_s1 = sld [smem:[#allocation18_spill]] }
  0x27   : > { %p1089_p0 = pnand %p1858_p13, %p1548_p3  ;;  %p1061_p1 = scmp.ge.s32.totalorder %s1412_s15, 1 }
  0x28   : > { %s364_s7 = scalar_lea.sflag [#allocation3], %s363_s30  ;;  %p406_p4 = scmp.lt.s32.totalorder %s1412_s15, 5 }
  0x29   : > { %s123_s25 = sadd.s32 1, %s1380_s29  ;;  %p130_p7 = scmp.ne.s32.totalorder %s1380_s29, %s1376_s28 }
  0x2a   : > { %p1595_p5 = pnand %p1061_p1, %p406_p4  ;;  %p136_p10 = scmp.ne.s32.totalorder %s1376_s28, %s1372_s27 }
  0x2b   : > { %s384_s3 = sand.u32 1, %s1380_s29   ;;  %p132_p11 = por %p130_p7, %p97_p2 }
  0x2c   : > { %s373_s20 = scalar_lea.hbm %s1876_s1, %s1057_s21  ;;  %p121_p3 = scmp.eq.s32.totalorder %s1572_s26, 0 }
  0x2d   : > { %s375_s8 = sshll.u32 %s373_s20, 4  ;;  %p1610_p13 = por %p136_p10, %p1554_p6  ;;  %s376_s8 = int_to_ptr.hbm [resolvable:$true] %s375_s8 }
  0x2e   : > { %1091 = dma.hbm_to_vmem [thread:$0]  (!%p1089_p0), %s376_s8, 64, %s378_s18, %s364_s7  }
  0x2f   : > { %s1058_s30 = sshll.u32 %s384_s3, 2  ;;  %s1369_s16 = sshll.u32 %s1408_s14, 3 }
  0x30   : > { %s1615_s8 = scalar_select %p121_p3, %s1380_s29, %s123_s25  }
  0x31   : > { %s1368_s17 = sadd.s32 4, %s1369_s16  ;;  %s388_s18 = scalar_lea.vmem [#allocation5], %s1058_s30 }
  0x32   : > { %s401_s21 = sshll.u32 %s388_s18, 4  ;;  %s397_s27 = scalar_lea.hbm %s1843_s2, %s1368_s17  ;;  %s402_s21 = int_to_ptr.vmem [resolvable:$true] %s401_s21 }
  0x33   : > { %s399_s1 = sshll.u32 %s397_s27, 4  ;;  %p1879_p2 = scmp.lt.s32.totalorder %s1412_s15, 4  ;;  %s400_s1 = int_to_ptr.hbm [resolvable:$true] %s399_s1 }
  0x34   : > { %s385_s26 = scalar_lea.sflag [#allocation6], %s384_s3  ;;  %s1253_s25 = sshra.s32 %s400_s1, 4  ;;  %s1254_s25 = int_to_ptr.hbm [resolvable:$true] %s1253_s25 }
  0x35   : > { %p1623_p0 = pnand %p1879_p2, %p132_p11  ;;  %s1255_s14 = scalar_lea.hbm %s1254_s25, 4 }
  0x36   : > { %p1256_p6 = scmp.ne.s32.totalorder %s1254_s25, %s1255_s14  ;;  %s1260_s17 = scalar_lea.hbm %s1843_s2, 16 }
  0x37   : > { %p1257_p1 = pneg %p1623_p0  ;;  %p1262_p10 = scmp.lt.s32.totalorder %s1260_s17, %s1255_s14 }
  0x39   : > { %p1258_p4 = pnand %p1257_p1, %p1256_p6 }
  0x3b   : > { %p1259_p7 = pneg %p1258_p4 }
  0x3d   : > { %p1264_p11 = pnand %p1262_p10, %p1259_p7 }
  0x3f   : > { %1267 = shalt.err (!%p1264_p11)
}
  0x40   : > { %1094 = dma.hbm_to_vmem [thread:$0]  (!%p1623_p0), %s400_s1, 64, %s402_s21, %s385_s26  }
  0x41   : > { %410 = sbr.rel (%p1595_p5) target bundleno = 722 (0x2d2), region = 52  ;;  %s1637_s3 = sand.u32 (!%p1595_p5), 1, %s1388_s9  }
  0x42   : > { %s1062_s18 = sshll.u32 (!%p1595_p5), %s1637_s3, 2  ;;  %s413_s20 = scalar_lea.sflag (!%p1595_p5), [#allocation3], %s1637_s3 }
  0x43   : > { %s1641_s7 = scalar_lea.vmem (!%p1595_p5), [#allocation2], %s1062_s18 }
  0x46   : > { %1356 = dma.done.wait (%p1562_p8), %s413_s20, 64  }
  0x47   : > { %1358 = vsyncadd (%p1562_p8), %s413_s20, 4294967232  ;;  %s422_s1 = sand.u32 1, %s1376_s28  }
  0x48   : > { %s1648_s14 = sshll.u32 %s422_s1, 2  ;;  %s423_s19 = scalar_lea.sflag [#allocation6], %s422_s1 }
  0x49   : > { %s426_s21 = scalar_lea.vmem [#allocation5], %s1648_s14 }
  0x4a   : > { %1360 = dma.done.wait (%p1610_p13), %s423_s19, 64  }
  0x4b   : > { %1362 = vsyncadd (%p1610_p13), %s423_s19, 4294967232  ;;  %s1065_s27 = sadd.s32 4294967295, %s1396_s11  ;;  %p495_p5 = scmp.lt.s32.totalorder %s1400_s12, 1  ;;  %v1414_v0 = vmov 0   ;;  %v1415_v1 = vmov 2   ;;  %v543_v2 = vld [vmem:[%s1845_s4] sm:$0xff]  ;;  %v595_v9 = vlaneseq }
  0x4c   : > { %1208 = vset.pattern.permute.xlu1 %v1414_v0  ;;  %p493_p8 = scmp.gt.s32.totalorder %s1065_s27, 0  ;;  %p1066_p3 = scmp.lt.s32.totalorder %s1065_s27, 1  ;;  %1212 = vset.pattern.permute.xlu0 %v1414_v0  ;;  %v1417_v4 = vmov 1   ;;  %v527_v5 = vld [vmem:[%s1641_s7] sm:$0xf]  ;;  %v1418_v6 = vmov 3  }
  0x4d   : > { %s496_s24 = scalar_select %p495_p5, %s1400_s12, 1  ;;  %1210 = vset.pattern.permute.xlu2 %v1415_v1  ;;  %546 = vperm.xlu1 %1208, %v543_v2   ;;  %v526_v7 = vld [vmem:[%s426_s21] sm:$0xf]  ;;  %v585_v8 = vld [vmem:[%s1846_s5] sm:$0xff]  ;;  %v596_v10 = vand.u32 127, %v595_v9  ;;  %vm540_vm3 = vcmask 130048  }
  0x4e   : > { %s1910_s27 = smov (!%p493_p8, %s1065_s27), 0  ;;  %566 = vperm.xlu2 %1210, %v543_v2   ;;  %s1416_s20 = smov 16   ;;  %v1693_v16 = vld [vmem:[%s1847_s6] sm:$0xff]  ;;  %v1420_v61 = vmov 5   ;;  %v1421_v62 = vmov 6   ;;  %v1422_v63 = vmov 7  }
  0x4f   : > { %s1071_s23 = sshll.u32 %s496_s24, 1  ;;  %s1912_s27 = smov (!%p1066_p3, %s1910_s27), 1  ;;  %v597_v11 = vadd.s32 128, %v596_v10  ;;  %vm641_vm7 = vcmask 1047808   ;;  %vm684_vm8 = vcmask 916480   ;;  %vm660_vm9 = vcmask 924672  }
  0x50   : > { %s500_s25 = sadd.s32 %s1912_s27, %s1071_s23  ;;  %p598_p13 = scmp.eq.s32.totalorder %s1396_s11, 0  ;;  %vm708_vm10 = vcmask 908288   ;;  %vm726_vm11 = vcmask 793600   ;;  %vm744_vm12 = vcmask 1039360  }
  0x51   : > { %s1072_s30 = sshll.u32 %s500_s25, 2  ;;  %p600_p2 = scmp.eq.s32.totalorder %s1396_s11, 1 }
  0x52   : > { %s502_s18 = scalar_lea.vmem %s1841_s0, %s1072_s30  ;;  %s1885_s22 = sld [smem:[#allocation19_spill]] }
  0x53   : > { %v525_v3 = vld [vmem:[%s502_s18] sm:$0xf]  ;;  %s1676_s7 = scalar_select %p598_p13, 16, 0 }
  0x54   : > { %529 = vrot.lane.b32.xlu0 %v525_v3, %s1416_s20  ;;  %s1678_s27 = scalar_select %p600_p2, 144, 160  ;;  %v1423_v3 = vmov 8  }
  0x55   : > { %1209 = vset.pattern.permute.xlu1 %v1417_v4  ;;  %v602_v12 = vstv %s1676_s7  ;;  %s1419_s26 = smov 32   ;;  %s1425_s16 = smov 127  }
  0x56   : > { %1211 = vset.pattern.permute.xlu2 %v1418_v6  ;;  %556 = vperm.xlu1 %1209, %v543_v2   ;;  %v605_v13 = vstv %s1678_s27  ;;  %vm1682_vm0 = vcmp.ge.s32.totalorder %v597_v11, %v602_v12  ;;  %vm603_vm4 = vcmp.ge.s32.totalorder %v596_v10, %v602_v12  ;;  %s1426_s17 = smov 113   ;;  %s1427_s18 = smov 112  }
  0x57   : > { %576 = vperm.xlu2 %1211, %v543_v2   ;;  %vm1686_vm1 = vcmp.lt.s32.totalorder %v597_v11, %v605_v13  ;;  %vm606_vm5 = vcmp.lt.s32.totalorder %v596_v10, %v605_v13  ;;  %v1424_v13 = vmov 4   ;;  %s1429_s1 = smov 111   ;;  %s1886_s27 = sld [smem:[#allocation20_spill]] }
  0x58   : > { %vm609_vm2 = vmand %vm1682_vm0, %vm1686_vm1  ;;  %v616_v45 = vld [vmem:[%s1885_s22] ss:$2 sm:$0x3]  ;;  %v1073_v56 = vld [vmem:[%s1885_s22 + $0x1] ss:$2 sm:$0x3] }
  0x59   : > { %vm608_vm6 = vmand %vm603_vm4, %vm606_vm5  ;;  %v618_v50 = vperm.slane %v616_v45, 0  ;;  %v627_v59 = vperm.slane %v1073_v56, 0  ;;  %s1064_s14 = sshll.u32 %s1637_s3, 4  ;;  %s1076_s24 = sshll.u32 %s1400_s12, 2 }
  0x5a   : > { %s1777_s21 = scalar_lea.vmem [#allocation7], %s1064_s14  ;;  %s843_s23 = sadd.s32 %s1396_s11, %s1076_s24 }
  0x5b   : > { %s1077_s25 = sshll.u32 %s843_s23, 3  ;;  %s831_s7 = scalar_lea.sflag [#allocation4], %s1637_s3 }
  0x5c   : > { %533 = vrot.lane.b32.xlu0 %v527_v5, %s1416_s20 }
  0x5e   : > { %537 = vrot.lane.b32.xlu1 %v526_v7, %s1416_s20  ;;  %s1428_s20 = smov 97  }
  0x5f   : > { %1215 = vset.pattern.permute.xlu2 %v1415_v1  ;;  %1213 = vset.pattern.permute.xlu1 %v1414_v0  ;;  %v619_v1 = vperm.slane %v616_v45, 1 }
  0x64   : > { %588 = vperm.xlu0 %1212, %v585_v8  }
  0x6c   : > { %1214 = vset.pattern.permute.xlu0 %v1417_v4 }
  0x6d   : > { %673 = vperm.xlu0 %1214, %v1693_v16  }
  0x75   : > { %1218 = vset.pattern.permute.xlu0 %v1421_v62 }
  0xa8   : > { %v567_v19 = vpop.permute.xlu2 %566 }
  0xb1   : > { %v577_v29 = vpop.permute.xlu2 %576 }
  0xbf   : > { %v547_v17 = vpop.permute.xlu1 %546 }
  0xc6   : > { %v530_v18 = vpop.permute.xlu0 %529 }
  0xc8   : > { %v557_v20 = vpop.permute.xlu1 %556 }
  0xce   : > { %v534_v21 = vpop.permute.xlu0 %533 }
  0xcf   : > { %v541_v22 = vsel %vm540_vm3, %v530_v18, %v534_v21 }
  0xd0   : > { %v549_v23 = vperm.slane %v541_v22, 0  ;;  %v559_v24 = vperm.slane %v541_v22, 1  ;;  %v569_v25 = vperm.slane %v541_v22, 2  ;;  %v579_v28 = vperm.slane %v541_v22, 3  ;;  %v538_v30 = vpop.permute.xlu1 %537 }
  0xd1   : > { %v542_v32 = vsel %vm540_vm3, %v534_v21, %v538_v30 }
  0xd2   : > { %v551_v26 = vmul.f32 %v549_v23, %v547_v17  ;;  %v561_v27 = vmul.f32 %v559_v24, %v557_v20  ;;  %v571_v33 = vmul.f32 %v569_v25, %v567_v19  ;;  %v550_v34 = vperm.slane %v542_v32, 0 }
  0xd3   : > { %v560_v35 = vperm.slane %v542_v32, 1  ;;  %v570_v36 = vperm.slane %v542_v32, 2  ;;  %v581_v37 = vmul.f32 %v579_v28, %v577_v29  ;;  %v580_v41 = vperm.slane %v542_v32, 3 }
  0xd4   : > { %v563_v31 = vadd.f32 %v561_v27, %v551_v26  ;;  %v552_v39 = vmul.f32 %v550_v34, %v547_v17 }
  0xd5   : > { %v562_v40 = vmul.f32 %v560_v35, %v557_v20  ;;  %v572_v42 = vmul.f32 %v570_v36, %v567_v19  ;;  %v582_v49 = vmul.f32 %v580_v41, %v577_v29 }
  0xd6   : > { %v573_v38 = vadd.f32 %v571_v33, %v563_v31  ;;  %v589_v43 = vpop.permute.xlu0 %588 }
  0xd7   : > { %v564_v46 = vadd.f32 %v562_v40, %v552_v39 }
  0xd8   : > { %v583_v44 = vadd.f32 %v581_v37, %v573_v38 }
  0xd9   : > { %v574_v48 = vadd.f32 %v572_v42, %v564_v46  ;;  %v801_v42 = vld [vmem:[%s1886_s27] sm:$0xff] }
  0xda   : > { %v591_v47 = vadd.f32 %v589_v43, %v583_v44 }
  0xdb   : > { %v584_v52 = vadd.f32 %v582_v49, %v574_v48 }
  0xdc   : > { %v593_v51 = vmax.f32 %v591_v47, 0.0 }
  0xdd   : > { %v592_v54 = vadd.f32 %v589_v43, %v584_v52 }
  0xde   : > { %v1703_v53 = vsel %vm608_vm6, %v593_v51, 0.0 }
  0xdf   : > { %666 = vrot.lane.b32.xlu1 %v1703_v53, %s1419_s26  ;;  %v1708_v55 = vmul.f32 %v618_v50, %v1703_v53  ;;  %v594_v57 = vmax.f32 %v592_v54, 0.0  ;;  %v1724_v60 = vmul.f32 %v627_v59, %v1703_v53 }
  0xe1   : > { %642 = vrot.lane.b32.xlu2 %v1708_v55, %s1419_s26  ;;  %v1720_v58 = vsel %vm609_vm2, %v594_v57, 0.0 }
  0xe2   : > { %v623_v2 = vmul.f32 %v619_v1, %v1720_v58 }
  0xe7   : > { %649 = vperm.xlu1 %1213, %v1693_v16  }
  0xe9   : > { %690 = vrot.lane.b32.xlu2 %v1724_v60, %s1419_s26 }
  0xef   : > { %1216 = vset.pattern.permute.xlu1 %v1418_v6  ;;  %v628_v6 = vperm.slane %v1073_v56, 1 }
  0xf0   : > { %715 = vperm.xlu1 %1216, %v1693_v16  }
  0xf1   : > { %697 = vperm.xlu2 %1215, %v1693_v16   ;;  %v632_v7 = vmul.f32 %v628_v6, %v1720_v58 }
  0xf8   : > { %1219 = vset.pattern.permute.xlu1 %v1422_v63 }
  0xf9   : > { %1217 = vset.pattern.permute.xlu2 %v1420_v61 }
  0xfa   : > { %733 = vperm.xlu2 %1217, %v1693_v16  }
 0x102   : > { %1220 = vset.pattern.permute.xlu2 %v1423_v3 }
 0x13b   : > { %v643_v4 = vpop.permute.xlu2 %642 }
 0x13c   : > { %v644_v5 = vsel %vm641_vm7, %v643_v4, %v623_v2 }
 0x13d   : > { %645 = vrot.lane.b32.xlu0 %v644_v5, %s1419_s26 }
 0x143   : > { %v691_v8 = vpop.permute.xlu2 %690 }
 0x144   : > { %v692_v9 = vsel %vm641_vm7, %v691_v8, %v632_v7 }
 0x145   : > { %751 = vperm.xlu0 %1218, %v1693_v16   ;;  %693 = vrot.lane.b32.xlu1 %v692_v9, %s1419_s26 }
 0x14b   : > { %v698_v10 = vpop.permute.xlu2 %697 }
 0x14c   : > { %v700_v32 = vmul.f32 %v698_v10, %v692_v9 }
 0x14d   : > { %768 = vperm.xlu1 %1219, %v1693_v16   ;;  %1222 = vset.pattern.permute.xlu0 %v1414_v0  ;;  %v674_v0 = vpop.permute.xlu0 %673 }
 0x151   : > { %v667_v11 = vpop.permute.xlu1 %666 }
 0x152   : > { %v668_v12 = vsel %vm641_vm7, %v667_v11, %v1720_v58 }
 0x153   : > { %669 = vrot.lane.b32.xlu2 %v668_v12, %s1419_s26  ;;  %v676_v19 = vmul.f32 %v674_v0, %v668_v12 }
 0x154   : > { %v734_v14 = vpop.permute.xlu2 %733 }
 0x155   : > { %1221 = vset.pattern.permute.xlu1 %v1424_v13  ;;  %v736_v15 = vmul.f32 %v734_v14, %v1724_v60 }
 0x156   : > { %636 = vperm.xlu1 %1221, %v1693_v16  }
 0x159   : > { %v650_v17 = vpop.permute.xlu1 %649 }
 0x15a   : > { %v652_v18 = vmul.f32 %v650_v17, %v644_v5 }
 0x15b   : > { %785 = vperm.xlu2 %1220, %v1693_v16   ;;  %v737_v16 = vmul.f32 %v734_v14, %v692_v9 }
 0x15e   : > { %740 = vrot.lane.b32.xlu1 %v736_v15, %s1425_s16 }
 0x162   : > { %v716_v20 = vpop.permute.xlu1 %715 }
 0x163   : > { %656 = vrot.lane.b32.xlu2 %v652_v18, %s1426_s17  ;;  %v718_v21 = vmul.f32 %v716_v20, %v644_v5 }
 0x166   : > { %680 = vrot.lane.b32.xlu1 %v676_v19, %s1427_s18 }
 0x16b   : > { %722 = vrot.lane.b32.xlu2 %v718_v21, %s1428_s20 }
 0x173   : > { %742 = vrot.lane.b32.xlu2 %v737_v16, %s1425_s16 }
 0x1ad   : > { %v670_v22 = vpop.permute.xlu2 %669 }
 0x1ae   : > { %v671_v23 = vsel %vm641_vm7, %v670_v22, %v667_v11 }
 0x1af   : > { %v677_v24 = vmul.f32 %v674_v0, %v671_v23  ;;  %v646_v25 = vpop.permute.xlu0 %645 }
 0x1b0   : > { %v647_v35 = vsel %vm641_vm7, %v646_v25, %v643_v4 }
 0x1b1   : > { %682 = vrot.lane.b32.xlu2 %v677_v24, %s1427_s18  ;;  %v653_v37 = vmul.f32 %v650_v17, %v647_v35  ;;  %v719_v40 = vmul.f32 %v716_v20, %v647_v35 }
 0x1b5   : > { %v786_v36 = vpop.permute.xlu2 %785 }
 0x1b6   : > { %v789_v38 = vmul.f32 %v786_v36, %v692_v9  ;;  %v788_v39 = vmul.f32 %v786_v36, %v1724_v60 }
 0x1b7   : > { %v694_v26 = vpop.permute.xlu1 %693  ;;  %v752_v27 = vpop.permute.xlu0 %751 }
 0x1b8   : > { %v695_v28 = vsel %vm641_vm7, %v694_v26, %v691_v8  ;;  %v754_v29 = vmul.f32 %v752_v27, %v1708_v55  ;;  %v755_v34 = vmul.f32 %v752_v27, %v644_v5 }
 0x1b9   : > { %v701_v30 = vmul.f32 %v698_v10, %v695_v28 }
 0x1ba   : > { %758 = vrot.lane.b32.xlu0 %v754_v29, %s1426_s17 }
 0x1bb   : > { %706 = vrot.lane.b32.xlu1 %v701_v30, %s1429_s1 }
 0x1bd   : > { %v657_v43 = vpop.permute.xlu2 %656 }
 0x1bf   : > { %v769_v31 = vpop.permute.xlu1 %768 }
 0x1c0   : > { %v771_v33 = vmul.f32 %v769_v31, %v1703_v53  ;;  %v772_v41 = vmul.f32 %v769_v31, %v668_v12 }
 0x1c2   : > { %775 = vrot.lane.b32.xlu2 %v771_v33, %s1427_s18  ;;  %704 = vrot.lane.b32.xlu0 %v700_v32, %s1429_s1 }
 0x1c3   : > { %760 = vrot.lane.b32.xlu1 %v755_v34, %s1426_s17 }
 0x1c5   : > { %v723_v45 = vpop.permute.xlu2 %722 }
 0x1c8   : > { %v637_v44 = vpop.permute.xlu1 %636 }
 0x1c9   : > { %v640_v56 = vmul.f32 %v637_v44, %v1720_v58  ;;  %v639_v59 = vmul.f32 %v637_v44, %v1703_v53 }
 0x1ca   : > { %794 = vrot.lane.b32.xlu2 %v789_v38, %s1429_s1  ;;  %658 = vrot.lane.b32.xlu0 %v653_v37, %s1426_s17  ;;  %s1888_s17 = sld [smem:[#allocation21_spill]] }
 0x1cb   : > { %792 = vrot.lane.b32.xlu1 %v788_v39, %s1429_s1  ;;  %s846_s1 = sshll.u32 %s1777_s21, 4  ;;  %s847_s1 = int_to_ptr.vmem [resolvable:$true] %s846_s1 }
 0x1cd   : > { %v743_v47 = vpop.permute.xlu2 %742 }
 0x1d0   : > { %v741_v46 = vpop.permute.xlu1 %740  ;;  %s1303_s14 = scalar_lea.hbm %s1888_s17, 64 }
 0x1d1   : > { %v745_v13 = vsel %vm744_vm12, %v741_v46, %v743_v47 }
 0x1d2   : > { %815 = vrot.lane.b32.xlu2 %v1720_v58, %s1427_s18  ;;  %724 = vrot.lane.b32.xlu0 %v719_v40, %s1428_s20  ;;  %s845_s20 = scalar_lea.hbm %s1888_s17, %s1077_s25 }
 0x1d3   : > { %813 = vrot.lane.b32.xlu1 %v1703_v53, %s1427_s18  ;;  %s848_s19 = sshll.u32 %s845_s20, 4  ;;  %s849_s19 = int_to_ptr.hbm [resolvable:$true] %s848_s19 }
 0x1d4   : > { %s1297_s27 = sshra.s32 %s849_s19, 4  ;;  %s1298_s27 = int_to_ptr.hbm [resolvable:$true] %s1297_s27 }
 0x1d5   : > { %s1299_s12 = scalar_lea.hbm %s1298_s27, 16  ;;  %p1304_p4 = scmp.lt.s32.totalorder %s1298_s27, %s1888_s17 }
 0x1d6   : > { %p1300_p0 = scmp.ne.s32.totalorder %s1298_s27, %s1299_s12  ;;  %p1305_p7 = scmp.lt.s32.totalorder %s1303_s14, %s1299_s12 }
 0x1d8   : > { %v681_v48 = vpop.permute.xlu1 %680  ;;  %p1301_p6 = pnand %p1300_p0, %p1566_p9  ;;  %p1306_p10 = por %p1305_p7, %p1304_p4 }
 0x1da   : > { %777 = vrot.lane.b32.xlu0 %v772_v41, %s1427_s18  ;;  %p1302_p1 = pneg %p1301_p6 }
 0x1dc   : > { %p1307_p11 = pnand %p1306_p10, %p1302_p1 }
 0x1e2   : > { %804 = vperm.xlu0 %1222, %v801_v42  }
 0x20b   : > { %v683_v49 = vpop.permute.xlu2 %682 }
 0x20c   : > { %v685_v2 = vsel %vm684_vm8, %v681_v48, %v683_v49 }
 0x21c   : > { %v776_v52 = vpop.permute.xlu2 %775 }
 0x224   : > { %v795_v57 = vpop.permute.xlu2 %794 }
 0x22c   : > { %v759_v50 = vpop.permute.xlu0 %758  ;;  %v816_v7 = vpop.permute.xlu2 %815 }
 0x22d   : > { %v707_v51 = vpop.permute.xlu1 %706 }
 0x234   : > { %v705_v54 = vpop.permute.xlu0 %704 }
 0x235   : > { %v761_v55 = vpop.permute.xlu1 %760  ;;  %v709_v58 = vsel %vm708_vm10, %v705_v54, %v707_v51 }
 0x236   : > { %v762_v17 = vsel %vm660_vm9, %v759_v50, %v761_v55 }
 0x23c   : > { %v659_v60 = vpop.permute.xlu0 %658 }
 0x23d   : > { %v661_v61 = vsel %vm660_vm9, %v657_v43, %v659_v60  ;;  %v665_v62 = vadd.f32 %v659_v60, %v640_v56  ;;  %v793_v63 = vpop.permute.xlu1 %792 }
 0x23e   : > { %v664_v1 = vadd.f32 %v661_v61, %v639_v59  ;;  %v796_v22 = vsel %vm708_vm10, %v793_v63, %v795_v57 }
 0x23f   : > { %v689_v3 = vadd.f32 %v683_v49, %v665_v62 }
 0x240   : > { %v688_v4 = vadd.f32 %v685_v2, %v664_v1 }
 0x241   : > { %v713_v5 = vadd.f32 %v707_v51, %v689_v3 }
 0x242   : > { %v712_v6 = vadd.f32 %v709_v58, %v688_v4 }
 0x244   : > { %v725_v53 = vpop.permute.xlu0 %724 }
 0x245   : > { %v727_v8 = vsel %vm726_vm11, %v723_v45, %v725_v53  ;;  %v731_v9 = vadd.f32 %v725_v53, %v713_v5  ;;  %v814_v10 = vpop.permute.xlu1 %813 }
 0x246   : > { %v730_v11 = vadd.f32 %v727_v8, %v712_v6  ;;  %v817_v12 = vsel %vm684_vm8, %v814_v10, %v816_v7 }
 0x247   : > { %819 = vst [vmem:[%s1777_s21] sm:$0xff] %v817_v12  ;;  %v749_v15 = vadd.f32 %v743_v47, %v731_v9 }
 0x248   : > { %v748_v14 = vadd.f32 %v745_v13, %v730_v11 }
 0x249   : > { %v766_v19 = vadd.f32 %v761_v55, %v749_v15 }
 0x24a   : > { %v765_v18 = vadd.f32 %v762_v17, %v748_v14 }
 0x24c   : > { %v778_v0 = vpop.permute.xlu0 %777 }
 0x24d   : > { %v779_v20 = vsel %vm684_vm8, %v776_v52, %v778_v0  ;;  %v783_v16 = vadd.f32 %v778_v0, %v766_v19 }
 0x24e   : > { %v782_v21 = vadd.f32 %v779_v20, %v765_v18 }
 0x24f   : > { %v800_v24 = vadd.f32 %v795_v57, %v783_v16 }
 0x250   : > { %v799_v23 = vadd.f32 %v796_v22, %v782_v21 }
 0x254   : > { %v805_v25 = vpop.permute.xlu0 %804 }
 0x255   : > { %v807_v26 = vadd.f32 %v805_v25, %v799_v23  ;;  %v808_v27 = vadd.f32 %v805_v25, %v800_v24 }
 0x257   : > { %v809_v28 = vmax.f32 %v807_v26, 0.0  ;;  %v810_v29 = vmax.f32 %v808_v27, 0.0 }
 0x259   : > { %824 = vrot.lane.b32.xlu2 %v810_v29, %s1427_s18  ;;  %822 = vrot.lane.b32.xlu1 %v809_v28, %s1427_s18 }
 0x2b3   : > { %v825_v30 = vpop.permute.xlu2 %824 }
 0x2cb   : > { %v823_v31 = vpop.permute.xlu1 %822 }
 0x2cc   : > { %v826_v32 = vsel %vm684_vm8, %v823_v31, %v825_v30 }
 0x2cd   : > { %1074 = vst [vmem:[%s1777_s21 + $0x8] sm:$0xff] %v826_v32 }
 0x2ce   : > { %1310 = shalt.err (!%p1307_p11)
}
 0x2cf   : > { %s1430_s3 = smov 128   ;;  %s1431_s21 = smov 256  }
 0x2d0   : > { %s1432_s25 = smov 8  }
 0x2d1   : > { %1086 = dma.vmem_to_hbm [thread:$0]  (%p1566_p9), %s847_s1, 256, %s849_s19, %s831_s7, %s1430_s3, %s1431_s21, %s1432_s25  }
 0x2d2 PF: > { %s1889_s30 = sld [smem:[#allocation11_spill]]  ;;  %p1100_p5 = scmp.ge.s32.totalorder %s1412_s15, 2 }
 0x2d4   : > { %p1096_p8 = pnand %p1100_p5, %p1575_p12 }
 0x2d6   : > { %p1097_p3 = pneg %p1096_p8 }
 0x2d8   : > { %s863_s20 = sand.u32 1, %s1889_s30  }
 0x2d9   : > { %s864_s27 = scalar_lea.sflag [#allocation4], %s863_s20 }
 0x2da   : > { %1364 = dma.done.wait (%p1097_p3), %s864_s27, 256  }
 0x2db   : > { %1366 = vsyncadd (%p1097_p3), %s864_s27, 4294967040  ;;  %s27_s15 = sadd.s32 1, %s1412_s15   ;;  %s1891_s26 = sld [smem:[#allocation17_spill]] }
 0x2dc   : > { %p24_p13 = scmp.ge.s32.totalorder %s27_s15, 6   ;;  %s1892_s12 = sld [smem:[#allocation12_spill]] }
 0x2dd   : > { %s1893_s1 = sld [smem:[#allocation13_spill]]  ;;  %s1895_s27 = smov %s1376_s28 }
 0x2de   : > { %s1894_s14 = sld [smem:[#allocation14_spill]]  ;;  %s1896_s28 = smov %s1380_s29 }
 0x2df   : > { %s1897_s29 = smov %s1615_s8  ;;  %s1898_s30 = smov %s1388_s9 }
 0x2e0   : > { %s1899_s9 = smov %s1392_s10  ;;  %s1901_s11 = smov %s1404_s13 }
 0x2e1   : > { %s1900_s10 = smov %s1891_s26  ;;  %26 = sbr.rel (!%p24_p13) target bundleno = 16 (0x10), region = 127 }
 0x2e3   : > { %s1902_s13 = smov %s1893_s1 }
 0x2e6   :  { %870 = vsyncpa [#allocation3], 1 }
 0x2e7   :  { %872 = vsyncpa [#allocation3 + $0x1], 1 }
 0x2e8   :  { %873 = vsyncpa [#allocation6], 1 }
 0x2e9   :  { %875 = vsyncpa [#allocation6 + $0x1], 1 }
 0x2ea   :  { %876 = vsyncpa [#allocation4], 1 }
 0x2eb   :  { %878 = vsyncpa [#allocation4 + $0x1], 1 }

</bundles_post_ra>
